<compile_context>
chip_gen: v7x
topology: tpu7x:2x2x1
jax: 0.10.0
libtpu: 0.0.40
codegen_flags: <defaults>
</compile_context>

<pallas_src>
import math

import jax
import jax.numpy as jnp
from jax.experimental import pallas as pl
from jax.experimental.pallas import tpu as pltpu

_INV_SQRT2 = 1.0 / math.sqrt(2.0)


def _erf(z):
    # Abramowitz & Stegun 7.1.26 polynomial approximation, |abs error| <= 1.5e-7.
    a1, a2, a3, a4, a5 = (0.254829592, -0.284496736, 1.421413741,
                          -1.453152027, 1.061405429)
    p = 0.3275911
    az = jnp.abs(z)
    t = 1.0 / (1.0 + p * az)
    poly = ((((a5 * t + a4) * t + a3) * t + a2) * t + a1) * t
    y = 1.0 - poly * jnp.exp(-az * az)
    return jnp.where(z < 0.0, -y, y)


def _gelu_exact(x):
    # Matches torch.nn.GELU() default (erf form) to ~1e-7.
    return 0.5 * x * (1.0 + _erf(x * _INV_SQRT2))


def _masknet_kernel(mask_ref, w1_ref, b1_ref, w2_ref, b2_ref, w3_ref, b3_ref,
                    out_ref):
    x = mask_ref[...]                                               # (8, F)
    h = jnp.dot(x, w1_ref[...], preferred_element_type=jnp.float32)
    h = _gelu_exact(h + b1_ref[...])                                # (8, 4F)
    h = jnp.dot(h, w2_ref[...], preferred_element_type=jnp.float32)
    h = _gelu_exact(h + b2_ref[...])                                # (8, 4F)
    y = jnp.dot(h, w3_ref[...], preferred_element_type=jnp.float32)
    out_ref[...] = (y + b3_ref[...]).astype(out_ref.dtype)          # (8, 2*out)


def masknet_forward_pallas(params):
    """Forward pass of MaskNetStatic.

    `params` uses PyTorch layouts: mask (1, F), fcN_weight (out, in),
    fcN_bias (out,). Returns a (1, 2*out_feature) float32 array.
    """
    f32 = jnp.float32
    mask = params["mask"].astype(f32)                     # (1, F)
    # Pre-transpose to (in, out) so each operand's lane dim is the output dim.
    w1 = params["fc1_weight"].T.astype(f32)               # (F, 4F)
    w2 = params["fc2_weight"].T.astype(f32)               # (4F, 4F)
    w3 = params["fc3_weight"].T.astype(f32)               # (4F, 2*out)
    b1 = params["fc1_bias"].reshape(1, -1).astype(f32)    # (1, 4F)
    b2 = params["fc2_bias"].reshape(1, -1).astype(f32)    # (1, 4F)
    b3 = params["fc3_bias"].reshape(1, -1).astype(f32)    # (1, 2*out)

    F = mask.shape[1]
    H = w1.shape[1]
    O = w3.shape[1]

    # Pad the single mask row to 8 sublane rows (rows 1..7 are zeros and their
    # outputs are discarded); keeps every matmul sublane-aligned on the MXU.
    ROWS = 8
    mask_p = jnp.pad(mask, ((0, ROWS - mask.shape[0]), (0, 0)))     # (8, F)

    # TODO(synk): for very large in_features (fc2 weight (4F)^2 * 4B in the
    # tens of MiB) this single-block kernel should be re-tiled over a (K, N)
    # grid with a VMEM accumulator so it still fits v7x's 64 MiB VMEM.

    def full(shape):
        return pl.BlockSpec(shape, lambda i: (0,) * len(shape))

    out = pl.pallas_call(
        _masknet_kernel,
        out_shape=jax.ShapeDtypeStruct((ROWS, O), f32),
        grid_spec=pltpu.PrefetchScalarGridSpec(
            num_scalar_prefetch=0,
            grid=(1,),
            in_specs=[
                full((ROWS, F)),   # mask (padded)
                full((F, H)),      # w1
                full((1, H)),      # b1
                full((H, H)),      # w2
                full((1, H)),      # b2
                full((H, O)),      # w3
                full((1, O)),      # b3
            ],
            out_specs=full((ROWS, O)),
        ),
        compiler_params=pltpu.CompilerParams(
            dimension_semantics=("arbitrary",),
            vmem_limit_bytes=32 * 1024 * 1024,
        ),
    )(mask_p, w1, b1, w2, b2, w3, b3)

    return out[:1, :]                                               # (1, 2*out)


def masknet_forward_ref(params):
    """Pure-JAX reference mirroring the PyTorch module (exact erf GELU)."""
    f32 = jnp.float32
    gelu = lambda v: 0.5 * v * (1.0 + jax.scipy.special.erf(v * _INV_SQRT2))
    x = params["mask"].astype(f32)
    h = gelu(x @ params["fc1_weight"].T.astype(f32) + params["fc1_bias"].astype(f32))
    h = gelu(h @ params["fc2_weight"].T.astype(f32) + params["fc2_bias"].astype(f32))
    return h @ params["fc3_weight"].T.astype(f32) + params["fc3_bias"].astype(f32)


def init_masknet_params(key, in_features, out_feature):
    """Mimics the PyTorch module's init (uniform mask, Kaiming-style uniform
    linear init). Exact RNG values are irrelevant for the correctness check."""
    hid = in_features * 4
    out = out_feature * 2
    ks = jax.random.split(key, 7)

    def linear(kw, kb, fan_in, fan_out):
        bound = 1.0 / math.sqrt(fan_in)
        w = jax.random.uniform(kw, (fan_out, fan_in), jnp.float32, -bound, bound)
        b = jax.random.uniform(kb, (fan_out,), jnp.float32, -bound, bound)
        return w, b

    mask = jax.random.uniform(ks[0], (1, in_features), jnp.float32)  # torch.rand
    w1, b1 = linear(ks[1], ks[2], in_features, hid)
    w2, b2 = linear(ks[3], ks[4], hid, hid)
    w3, b3 = linear(ks[5], ks[6], hid, out)
    return {"mask": mask,
            "fc1_weight": w1, "fc1_bias": b1,
            "fc2_weight": w2, "fc2_bias": b2,
            "fc3_weight": w3, "fc3_bias": b3}


if __name__ == "__main__":
    in_features, out_feature = 32, 16        # hidden = 128, output = 32
    params = init_masknet_params(jax.random.PRNGKey(0), in_features, out_feature)

    out = masknet_forward_pallas(params)
    out = jax.block_until_ready(out)

    ref = masknet_forward_ref(params)
    assert out.shape == (1, 2 * out_feature) and out.dtype == jnp.float32
    max_diff = float(jnp.max(jnp.abs(out - ref)))
    assert jnp.allclose(out, ref, atol=1e-4, rtol=1e-4), f"max abs diff {max_diff}"

    print("KERNEL_OK")
</pallas_src>

<mosaic_0001>
module attributes {stable_mosaic.version = 11 : i64} {
  func.func @_masknet_kernel(%arg0: i32, %arg1: memref<8x32xf32, #tpu.memory_space<vmem>>, %arg2: memref<32x128xf32, #tpu.memory_space<vmem>>, %arg3: memref<1x128xf32, #tpu.memory_space<vmem>>, %arg4: memref<128x128xf32, #tpu.memory_space<vmem>>, %arg5: memref<1x128xf32, #tpu.memory_space<vmem>>, %arg6: memref<128x32xf32, #tpu.memory_space<vmem>>, %arg7: memref<1x32xf32, #tpu.memory_space<vmem>>, %arg8: memref<8x32xf32, #tpu.memory_space<vmem>>) attributes {dimension_semantics = [#tpu.dimension_semantics<arbitrary>], iteration_bounds = array<i64: 1>, scalar_prefetch = 0 : i64, scratch_operands = 0 : i64, tpu.core_type = #tpu.core_type<tc>, window_params = [{pipeline_mode = #tpu.pipeline_mode<synchronous>, transform_indices = @transform_0, window_bounds = array<i64: 8, 32>}, {pipeline_mode = #tpu.pipeline_mode<synchronous>, transform_indices = @transform_1, window_bounds = array<i64: 32, 128>}, {pipeline_mode = #tpu.pipeline_mode<synchronous>, transform_indices = @transform_2, window_bounds = array<i64: 1, 128>}, {pipeline_mode = #tpu.pipeline_mode<synchronous>, transform_indices = @transform_3, window_bounds = array<i64: 128, 128>}, {pipeline_mode = #tpu.pipeline_mode<synchronous>, transform_indices = @transform_4, window_bounds = array<i64: 1, 128>}, {pipeline_mode = #tpu.pipeline_mode<synchronous>, transform_indices = @transform_5, window_bounds = array<i64: 128, 32>}, {pipeline_mode = #tpu.pipeline_mode<synchronous>, transform_indices = @transform_6, window_bounds = array<i64: 1, 32>}, {pipeline_mode = #tpu.pipeline_mode<synchronous>, transform_indices = @transform_7, window_bounds = array<i64: 8, 32>}]} {
    %c0 = arith.constant 0 : index
    %c0_0 = arith.constant 0 : index
    %0 = vector.load %arg1[%c0, %c0_0] : memref<8x32xf32, #tpu.memory_space<vmem>>, vector<8x32xf32>
    %c0_1 = arith.constant 0 : index
    %c0_2 = arith.constant 0 : index
    %1 = vector.load %arg2[%c0_1, %c0_2] : memref<32x128xf32, #tpu.memory_space<vmem>>, vector<32x128xf32>
    %cst = arith.constant dense<0.000000e+00> : vector<8x128xf32>
    %2 = tpu.matmul %0, %1, %cst {dimension_numbers = #tpu.dot_dimension_numbers<[1], [0], [0], [1], [0, 0, 1, 1], [], []>} : vector<8x32xf32>, vector<32x128xf32>, vector<8x128xf32> -> vector<8x128xf32>
    %c0_3 = arith.constant 0 : index
    %c0_4 = arith.constant 0 : index
    %3 = vector.load %arg3[%c0_3, %c0_4] : memref<1x128xf32, #tpu.memory_space<vmem>>, vector<1x128xf32>
    %4 = vector.broadcast %3 : vector<1x128xf32> to vector<8x128xf32>
    %5 = arith.addf %2, %4 : vector<8x128xf32>
    %cst_5 = arith.constant 5.000000e-01 : f32
    %6 = vector.broadcast %cst_5 : f32 to vector<8x128xf32>
    %7 = arith.mulf %6, %5 : vector<8x128xf32>
    %cst_6 = arith.constant 0.707106769 : f32
    %8 = vector.broadcast %cst_6 : f32 to vector<8x128xf32>
    %9 = arith.mulf %5, %8 : vector<8x128xf32>
    %10 = math.absf %9 : vector<8x128xf32>
    %cst_7 = arith.constant 0.327591091 : f32
    %11 = vector.broadcast %cst_7 : f32 to vector<8x128xf32>
    %12 = arith.mulf %11, %10 : vector<8x128xf32>
    %cst_8 = arith.constant 1.000000e+00 : f32
    %13 = vector.broadcast %cst_8 : f32 to vector<8x128xf32>
    %14 = arith.addf %13, %12 : vector<8x128xf32>
    %cst_9 = arith.constant 1.000000e+00 : f32
    %15 = vector.broadcast %cst_9 : f32 to vector<8x128xf32>
    %16 = arith.divf %15, %14 : vector<8x128xf32>
    %cst_10 = arith.constant 1.06140542 : f32
    %17 = vector.broadcast %cst_10 : f32 to vector<8x128xf32>
    %18 = arith.mulf %17, %16 : vector<8x128xf32>
    %cst_11 = arith.constant -1.45315206 : f32
    %19 = vector.broadcast %cst_11 : f32 to vector<8x128xf32>
    %20 = arith.addf %18, %19 : vector<8x128xf32>
    %21 = arith.mulf %20, %16 : vector<8x128xf32>
    %cst_12 = arith.constant 1.42141378 : f32
    %22 = vector.broadcast %cst_12 : f32 to vector<8x128xf32>
    %23 = arith.addf %21, %22 : vector<8x128xf32>
    %24 = arith.mulf %23, %16 : vector<8x128xf32>
    %cst_13 = arith.constant -0.284496725 : f32
    %25 = vector.broadcast %cst_13 : f32 to vector<8x128xf32>
    %26 = arith.addf %24, %25 : vector<8x128xf32>
    %27 = arith.mulf %26, %16 : vector<8x128xf32>
    %cst_14 = arith.constant 0.254829586 : f32
    %28 = vector.broadcast %cst_14 : f32 to vector<8x128xf32>
    %29 = arith.addf %27, %28 : vector<8x128xf32>
    %30 = arith.mulf %29, %16 : vector<8x128xf32>
    %cst_15 = arith.constant 0.000000e+00 : f32
    %31 = vector.broadcast %cst_15 : f32 to vector<8x128xf32>
    %32 = arith.subf %31, %10 : vector<8x128xf32>
    %33 = arith.mulf %32, %10 : vector<8x128xf32>
    %34 = math.exp %33 : vector<8x128xf32>
    %35 = arith.mulf %30, %34 : vector<8x128xf32>
    %cst_16 = arith.constant 1.000000e+00 : f32
    %36 = vector.broadcast %cst_16 : f32 to vector<8x128xf32>
    %37 = arith.subf %36, %35 : vector<8x128xf32>
    %cst_17 = arith.constant 0.000000e+00 : f32
    %38 = vector.broadcast %cst_17 : f32 to vector<8x128xf32>
    %39 = arith.cmpf olt, %9, %38 : vector<8x128xf32>
    %cst_18 = arith.constant 0.000000e+00 : f32
    %40 = vector.broadcast %cst_18 : f32 to vector<8x128xf32>
    %41 = arith.subf %40, %37 : vector<8x128xf32>
    %42 = arith.select %39, %41, %37 : vector<8x128xi1>, vector<8x128xf32>
    %cst_19 = arith.constant 1.000000e+00 : f32
    %43 = vector.broadcast %cst_19 : f32 to vector<8x128xf32>
    %44 = arith.addf %43, %42 : vector<8x128xf32>
    %45 = arith.mulf %7, %44 : vector<8x128xf32>
    %c0_20 = arith.constant 0 : index
    %c0_21 = arith.constant 0 : index
    %46 = vector.load %arg4[%c0_20, %c0_21] : memref<128x128xf32, #tpu.memory_space<vmem>>, vector<128x128xf32>
    %cst_22 = arith.constant dense<0.000000e+00> : vector<8x128xf32>
    %47 = tpu.matmul %45, %46, %cst_22 {dimension_numbers = #tpu.dot_dimension_numbers<[1], [0], [0], [1], [0, 0, 1, 1], [], []>} : vector<8x128xf32>, vector<128x128xf32>, vector<8x128xf32> -> vector<8x128xf32>
    %c0_23 = arith.constant 0 : index
    %c0_24 = arith.constant 0 : index
    %48 = vector.load %arg5[%c0_23, %c0_24] : memref<1x128xf32, #tpu.memory_space<vmem>>, vector<1x128xf32>
    %49 = vector.broadcast %48 : vector<1x128xf32> to vector<8x128xf32>
    %50 = arith.addf %47, %49 : vector<8x128xf32>
    %cst_25 = arith.constant 5.000000e-01 : f32
    %51 = vector.broadcast %cst_25 : f32 to vector<8x128xf32>
    %52 = arith.mulf %51, %50 : vector<8x128xf32>
    %cst_26 = arith.constant 0.707106769 : f32
    %53 = vector.broadcast %cst_26 : f32 to vector<8x128xf32>
    %54 = arith.mulf %50, %53 : vector<8x128xf32>
    %55 = math.absf %54 : vector<8x128xf32>
    %cst_27 = arith.constant 0.327591091 : f32
    %56 = vector.broadcast %cst_27 : f32 to vector<8x128xf32>
    %57 = arith.mulf %56, %55 : vector<8x128xf32>
    %cst_28 = arith.constant 1.000000e+00 : f32
    %58 = vector.broadcast %cst_28 : f32 to vector<8x128xf32>
    %59 = arith.addf %58, %57 : vector<8x128xf32>
    %cst_29 = arith.constant 1.000000e+00 : f32
    %60 = vector.broadcast %cst_29 : f32 to vector<8x128xf32>
    %61 = arith.divf %60, %59 : vector<8x128xf32>
    %cst_30 = arith.constant 1.06140542 : f32
    %62 = vector.broadcast %cst_30 : f32 to vector<8x128xf32>
    %63 = arith.mulf %62, %61 : vector<8x128xf32>
    %cst_31 = arith.constant -1.45315206 : f32
    %64 = vector.broadcast %cst_31 : f32 to vector<8x128xf32>
    %65 = arith.addf %63, %64 : vector<8x128xf32>
    %66 = arith.mulf %65, %61 : vector<8x128xf32>
    %cst_32 = arith.constant 1.42141378 : f32
    %67 = vector.broadcast %cst_32 : f32 to vector<8x128xf32>
    %68 = arith.addf %66, %67 : vector<8x128xf32>
    %69 = arith.mulf %68, %61 : vector<8x128xf32>
    %cst_33 = arith.constant -0.284496725 : f32
    %70 = vector.broadcast %cst_33 : f32 to vector<8x128xf32>
    %71 = arith.addf %69, %70 : vector<8x128xf32>
    %72 = arith.mulf %71, %61 : vector<8x128xf32>
    %cst_34 = arith.constant 0.254829586 : f32
    %73 = vector.broadcast %cst_34 : f32 to vector<8x128xf32>
    %74 = arith.addf %72, %73 : vector<8x128xf32>
    %75 = arith.mulf %74, %61 : vector<8x128xf32>
    %cst_35 = arith.constant 0.000000e+00 : f32
    %76 = vector.broadcast %cst_35 : f32 to vector<8x128xf32>
    %77 = arith.subf %76, %55 : vector<8x128xf32>
    %78 = arith.mulf %77, %55 : vector<8x128xf32>
    %79 = math.exp %78 : vector<8x128xf32>
    %80 = arith.mulf %75, %79 : vector<8x128xf32>
    %cst_36 = arith.constant 1.000000e+00 : f32
    %81 = vector.broadcast %cst_36 : f32 to vector<8x128xf32>
    %82 = arith.subf %81, %80 : vector<8x128xf32>
    %cst_37 = arith.constant 0.000000e+00 : f32
    %83 = vector.broadcast %cst_37 : f32 to vector<8x128xf32>
    %84 = arith.cmpf olt, %54, %83 : vector<8x128xf32>
    %cst_38 = arith.constant 0.000000e+00 : f32
    %85 = vector.broadcast %cst_38 : f32 to vector<8x128xf32>
    %86 = arith.subf %85, %82 : vector<8x128xf32>
    %87 = arith.select %84, %86, %82 : vector<8x128xi1>, vector<8x128xf32>
    %cst_39 = arith.constant 1.000000e+00 : f32
    %88 = vector.broadcast %cst_39 : f32 to vector<8x128xf32>
    %89 = arith.addf %88, %87 : vector<8x128xf32>
    %90 = arith.mulf %52, %89 : vector<8x128xf32>
    %c0_40 = arith.constant 0 : index
    %c0_41 = arith.constant 0 : index
    %91 = vector.load %arg6[%c0_40, %c0_41] : memref<128x32xf32, #tpu.memory_space<vmem>>, vector<128x32xf32>
    %cst_42 = arith.constant dense<0.000000e+00> : vector<8x32xf32>
    %92 = tpu.matmul %90, %91, %cst_42 {dimension_numbers = #tpu.dot_dimension_numbers<[1], [0], [0], [1], [0, 0, 1, 1], [], []>} : vector<8x128xf32>, vector<128x32xf32>, vector<8x32xf32> -> vector<8x32xf32>
    %c0_43 = arith.constant 0 : index
    %c0_44 = arith.constant 0 : index
    %93 = vector.load %arg7[%c0_43, %c0_44] : memref<1x32xf32, #tpu.memory_space<vmem>>, vector<1x32xf32>
    %94 = vector.broadcast %93 : vector<1x32xf32> to vector<8x32xf32>
    %95 = arith.addf %92, %94 : vector<8x32xf32>
    %c0_45 = arith.constant 0 : index
    %c0_46 = arith.constant 0 : index
    %96 = vector.load %arg8[%c0_45, %c0_46] : memref<8x32xf32, #tpu.memory_space<vmem>>, vector<8x32xf32>
    tpu.vector_store %arg8[%c0_45, %c0_46], %95 {strides = array<i32>} : memref<8x32xf32, #tpu.memory_space<vmem>>, vector<8x32xf32>,
    return
  }
  func.func @transform_0(%arg0: i32) -> (i32, i32) {
    %c0_i32 = arith.constant 0 : i32
    %c0_i32_0 = arith.constant 0 : i32
    %c0_i32_1 = arith.constant 0 : i32
    return %c0_i32, %c0_i32_0 : i32, i32
  }
  func.func @transform_1(%arg0: i32) -> (i32, i32) {
    %c0_i32 = arith.constant 0 : i32
    %c0_i32_0 = arith.constant 0 : i32
    %c0_i32_1 = arith.constant 0 : i32
    return %c0_i32, %c0_i32_0 : i32, i32
  }
  func.func @transform_2(%arg0: i32) -> (i32, i32) {
    %c0_i32 = arith.constant 0 : i32
    %c0_i32_0 = arith.constant 0 : i32
    %c0_i32_1 = arith.constant 0 : i32
    return %c0_i32, %c0_i32_0 : i32, i32
  }
  func.func @transform_3(%arg0: i32) -> (i32, i32) {
    %c0_i32 = arith.constant 0 : i32
    %c0_i32_0 = arith.constant 0 : i32
    %c0_i32_1 = arith.constant 0 : i32
    return %c0_i32, %c0_i32_0 : i32, i32
  }
  func.func @transform_4(%arg0: i32) -> (i32, i32) {
    %c0_i32 = arith.constant 0 : i32
    %c0_i32_0 = arith.constant 0 : i32
    %c0_i32_1 = arith.constant 0 : i32
    return %c0_i32, %c0_i32_0 : i32, i32
  }
  func.func @transform_5(%arg0: i32) -> (i32, i32) {
    %c0_i32 = arith.constant 0 : i32
    %c0_i32_0 = arith.constant 0 : i32
    %c0_i32_1 = arith.constant 0 : i32
    return %c0_i32, %c0_i32_0 : i32, i32
  }
  func.func @transform_6(%arg0: i32) -> (i32, i32) {
    %c0_i32 = arith.constant 0 : i32
    %c0_i32_0 = arith.constant 0 : i32
    %c0_i32_1 = arith.constant 0 : i32
    return %c0_i32, %c0_i32_0 : i32, i32
  }
  func.func @transform_7(%arg0: i32) -> (i32, i32) {
    %c0_i32 = arith.constant 0 : i32
    %c0_i32_0 = arith.constant 0 : i32
    %c0_i32_1 = arith.constant 0 : i32
    return %c0_i32, %c0_i32_0 : i32, i32
  }
}

</mosaic_0001>

<bundles_post_ra>
// kernel: tpu_custom_call.1
= control target key start
LH: loop header
LB: loop body
LE: loop exit
PB: predicated region body
PF: predicated region fallthrough
CT: control target
= control target key end

     0   :  { %v582_v3 = vmov 0.0|0.0   ;;  %vm583_vm0 = vmmov 0   ;;  %v584_v6 = vmov 0.0   ;;  %s778_s0 = inlined_call_operand.vmem [shape: f32[8,32], index: 0, kind: input, shape index: {}]   ;;  %s779_s1 = inlined_call_operand.vmem [shape: f32[32,128], index: 1, kind: input, shape index: {}]   ;;  %s780_s2 = inlined_call_operand.vmem [shape: f32[1,128], index: 2, kind: input, shape index: {}]   ;;  %s781_s3 = inlined_call_operand.vmem [shape: f32[128,128], index: 3, kind: input, shape index: {}]   ;;  %s782_s4 = inlined_call_operand.vmem [shape: f32[1,128], index: 4, kind: input, shape index: {}]   ;;  %s783_s5 = inlined_call_operand.vmem [shape: f32[128,32], index: 5, kind: input, shape index: {}]   ;;  %s784_s6 = inlined_call_operand.vmem [shape: f32[1,32], index: 6, kind: input, shape index: {}]   ;;  %s785_s7 = inlined_call_operand.hbm [shape: f32[8,32], index: 7, kind: output, shape index: {}]  }
   0x1   :  { %v28_v0 = vld [vmem:[%s779_s1] sm:$0xff]  ;;  %v29_v1 = vld [vmem:[%s779_s1 + $0x8] sm:$0xff]  ;;  %v30_v2 = vld [vmem:[%s779_s1 + $0x10] sm:$0xff]  ;;  %492 = vmatprep.subr.bf16.mxu0 %v582_v3  ;;  %419 = vmatprep.mubr.msk.f32.mxu0 %vm583_vm0, %v584_v6 }
   0x2   :  { %v493_v4 = vpack.c.bf16 %v29_v1, %v28_v0  ;;  %v31_v5 = vld [vmem:[%s779_s1 + $0x18] sm:$0xff]  ;;  %498 = vmatprep.subr.bf16.mxu1 %v582_v3  ;;  %454 = vmatprep.mubr.msk.f32.mxu1 %vm583_vm0, %v584_v6 }
   0x3   :  { %12 = vsyncpa [#allocation3], 0  ;;  %v496_v7 = vpack.c.bf16 %v31_v5, %v30_v2  ;;  %v27_v8 = vld [vmem:[%s778_s0] sm:$0xff]  ;;  %vm39_vm1 = vcmask 261120   ;;  %v141_v10 = vld [vmem:[%s781_s3 + $0x8] sm:$0xff]  ;;  %s585_s23 = smov [#allocation2]  }
   0x4   :  { %494 = vmatpush3.bf16.msra.mxu0 %v493_v4  ;;  %v140_v9 = vld [vmem:[%s781_s3] sm:$0xff]  ;;  %v142_v11 = vld [vmem:[%s781_s3 + $0x10] sm:$0xff]  ;;  %v143_v13 = vld [vmem:[%s781_s3 + $0x18] sm:$0xff]  ;;  %s360_s24 = sshll.u32 %s585_s23, 4  ;;  %s361_s24 = int_to_ptr.vmem [resolvable:$true] %s360_s24 }
   0x5   :  { %495 = vmatprep.subr.bf16.mxu0 %v582_v3  ;;  %v499_v12 = vpack.c.bf16 %v141_v10, %v140_v9  ;;  %v502_v14 = vpack.c.bf16 %v143_v13, %v142_v11  ;;  %v144_v15 = vld [vmem:[%s781_s3 + $0x20] sm:$0xff]  ;;  %v145_v16 = vld [vmem:[%s781_s3 + $0x28] sm:$0xff]  ;;  %v146_v18 = vld [vmem:[%s781_s3 + $0x30] sm:$0xff]  ;;  %s558_s25 = scalar_lea.vmem %s361_s24, 128  ;;  %p563_p1 = scmp.lt.s32.totalorder %s361_s24, %s361_s24 }
   0x6   :  { %v505_v17 = vpack.c.bf16 %v145_v16, %v144_v15  ;;  %v147_v19 = vld [vmem:[%s781_s3 + $0x38] sm:$0xff]  ;;  %v148_v21 = vld [vmem:[%s781_s3 + $0x40] sm:$0xff]  ;;  %v149_v22 = vld [vmem:[%s781_s3 + $0x48] sm:$0xff]  ;;  %p559_p0 = scmp.ne.s32.totalorder %s361_s24, %s558_s25  ;;  %p564_p2 = scmp.lt.s32.totalorder %s558_s25, %s558_s25 }
   0x7   :  { %500 = vmatpush3.bf16.msra.mxu1 %v499_v12  ;;  %v508_v20 = vpack.c.bf16 %v147_v19, %v146_v18  ;;  %v511_v23 = vpack.c.bf16 %v149_v22, %v148_v21  ;;  %v150_v24 = vld [vmem:[%s781_s3 + $0x50] sm:$0xff]  ;;  %v151_v25 = vld [vmem:[%s781_s3 + $0x58] sm:$0xff]  ;;  %v152_v27 = vld [vmem:[%s781_s3 + $0x60] sm:$0xff] }
   0x8   :  { %497 = vmatpush3.bf16.msra.mxu0 %v496_v7  ;;  %501 = vmatprep.subr.bf16.mxu1 %v582_v3  ;;  %v514_v26 = vpack.c.bf16 %v151_v25, %v150_v24  ;;  %v153_v28 = vld [vmem:[%s781_s3 + $0x68] sm:$0xff]  ;;  %v154_v30 = vld [vmem:[%s781_s3 + $0x70] sm:$0xff]  ;;  %v155_v31 = vld [vmem:[%s781_s3 + $0x78] sm:$0xff]  ;;  %p565_p3 = por %p564_p2, %p563_p1 }
   0x9   :  { %522 = vmatprep.subr.bf16.mxu0 %v582_v3  ;;  %v517_v29 = vpack.c.bf16 %v153_v28, %v152_v27  ;;  %v520_v32 = vpack.c.bf16 %v155_v31, %v154_v30  ;;  %v368_v33 = vld [vmem:[%s780_s2] ss:$0 sm:$0xff]  ;;  %v261_v63 = vld [vmem:[%s783_s5 + $0x8] sm:$0xff]  ;;  %v262_v1 = vld [vmem:[%s783_s5 + $0x10] sm:$0xff] }
   0xa   :  { %v260_v62 = vld [vmem:[%s783_s5] sm:$0xff]  ;;  %v263_v2 = vld [vmem:[%s783_s5 + $0x18] sm:$0xff]  ;;  %v269_v12 = vld [vmem:[%s783_s5 + $0x48] sm:$0xff]  ;;  %p566_p4 = pnand %p565_p3, %p559_p0 }
   0xb   :  { %420 = vmatmul.mubr.msk.f32.vlgmr.msra.gmra.mrb[0].mxu0 %vm39_vm1, %v27_v8  ;;  %503 = vmatpush3.bf16.msra.mxu1 %v502_v14  ;;  %v523_v0 = vpack.c.bf16 %v261_v63, %v260_v62  ;;  %v526_v4 = vpack.c.bf16 %v263_v2, %v262_v1  ;;  %v264_v5 = vld [vmem:[%s783_s5 + $0x20] sm:$0xff]  ;;  %v266_v8 = vld [vmem:[%s783_s5 + $0x30] sm:$0xff]  ;;  %v267_v9 = vld [vmem:[%s783_s5 + $0x38] sm:$0xff] }
   0xc   :  { %489 = vmatprep.mubr.msk.f32.mxu0 %vm583_vm0, %v584_v6  ;;  %504 = vmatprep.subr.bf16.mxu1 %v582_v3  ;;  %v265_v6 = vld [vmem:[%s783_s5 + $0x28] sm:$0xff]  ;;  %v532_v10 = vpack.c.bf16 %v267_v9, %v266_v8  ;;  %v268_v11 = vld [vmem:[%s783_s5 + $0x40] sm:$0xff]  ;;  %v270_v14 = vld [vmem:[%s783_s5 + $0x50] sm:$0xff] }
   0xd   :  { %524 = vmatpush3.bf16.msra.mxu0 %v523_v0  ;;  %v529_v7 = vpack.c.bf16 %v265_v6, %v264_v5  ;;  %v535_v13 = vpack.c.bf16 %v269_v12, %v268_v11  ;;  %v271_v15 = vld [vmem:[%s783_s5 + $0x58] sm:$0xff]  ;;  %v273_v18 = vld [vmem:[%s783_s5 + $0x68] sm:$0xff] }
   0xe   :  { %525 = vmatprep.subr.bf16.mxu0 %v582_v3  ;;  %v538_v16 = vpack.c.bf16 %v271_v15, %v270_v14  ;;  %v275_v21 = vld [vmem:[%s783_s5 + $0x78] sm:$0xff] }
   0xf   :  { %506 = vmatpush3.bf16.msra.mxu1 %v505_v17  ;;  %v272_v17 = vld [vmem:[%s783_s5 + $0x60] sm:$0xff] }
  0x10   :  { %507 = vmatprep.subr.bf16.mxu1 %v582_v3  ;;  %v541_v19 = vpack.c.bf16 %v273_v18, %v272_v17 }
  0x11   :  { %527 = vmatpush3.bf16.msra.mxu0 %v526_v4 }
  0x12   :  { %528 = vmatprep.subr.bf16.mxu0 %v582_v3 }
  0x13   :  { %509 = vmatpush3.bf16.msra.mxu1 %v508_v20  ;;  %v274_v20 = vld [vmem:[%s783_s5 + $0x70] sm:$0xff] }
  0x14   :  { %510 = vmatprep.subr.bf16.mxu1 %v582_v3  ;;  %v544_v22 = vpack.c.bf16 %v275_v21, %v274_v20 }
  0x15   :  { %530 = vmatpush3.bf16.msra.mxu0 %v529_v7 }
  0x16   :  { %531 = vmatprep.subr.bf16.mxu0 %v582_v3 }
  0x17   :  { %512 = vmatpush3.bf16.msra.mxu1 %v511_v23  ;;  %v370_v23 = vld [vmem:[%s782_s4] ss:$0 sm:$0xff] }
  0x18   :  { %513 = vmatprep.subr.bf16.mxu1 %v582_v3 }
  0x19   :  { %533 = vmatpush3.bf16.msra.mxu0 %v532_v10 }
  0x1a   :  { %534 = vmatprep.subr.bf16.mxu0 %v582_v3 }
  0x1b   :  { %515 = vmatpush3.bf16.msra.mxu1 %v514_v26 }
  0x1c   :  { %516 = vmatprep.subr.bf16.mxu1 %v582_v3 }
  0x1d   :  { %536 = vmatpush3.bf16.msra.mxu0 %v535_v13 }
  0x1e   :  { %537 = vmatprep.subr.bf16.mxu0 %v582_v3 }
  0x1f   :  { %518 = vmatpush3.bf16.msra.mxu1 %v517_v29 }
  0x20   :  { %519 = vmatprep.subr.bf16.mxu1 %v582_v3 }
  0x21   :  { %539 = vmatpush3.bf16.msra.mxu0 %v538_v16 }
  0x22   :  { %540 = vmatprep.subr.bf16.mxu0 %v582_v3 }
  0x23   :  { %521 = vmatpush3.bf16.msra.mxu1 %v520_v32 }
  0x25   :  { %542 = vmatpush3.bf16.msra.mxu0 %v541_v19 }
  0x26   :  { %543 = vmatprep.subr.bf16.mxu0 %v582_v3 }
  0x29   :  { %545 = vmatpush3.bf16.msra.mxu0 %v544_v22 }
  0xde   :  { %v109_v34 = vpop.f32.mrb[0].mxu0 }
  0xdf   :  { %v110_v35 = vadd.f32 %v368_v33, %v109_v34  ;;  %v421_v36 = vpop.f32.mrb[1].mxu0 }
  0xe1   :  { %v114_v37 = vmul.f32 0.70710677, %v110_v35  ;;  %v113_v59 = vmul.f32 0.5, %v110_v35 }
  0xe3   :  { %v115_v38 = vand.u32 2147483647, %v114_v37  ;;  %vm135_vm2 = vcmp.lt.f32.partialorder %v114_v37, 0.0 }
  0xe5   :  { %v116_v39 = vmul.f32 0.3275911, %v115_v38  ;;  %v129_v41 = vsub.f32 0.0, %v115_v38 }
  0xe7   :  { %v117_v40 = vadd.f32 1.0, %v116_v39  ;;  %v130_v43 = vmul.f32 %v129_v41, %v115_v38 }
  0xe9   :  { %550 = vrcp.f32 %v117_v40  ;;  %v131_v46 = vmul.f32 1.442695, %v130_v43 }
  0xeb   :  { %552 = vpow2.f32 %v131_v46 }
  0xf3   :  { %v551_v42 = vpop.eup %550 }
  0xf4   :  { %v120_v44 = vmul.f32 1.0614054, %v551_v42 }
  0xf5   :  { %v553_v54 = vpop.eup %552 }
  0xf6   :  { %v121_v45 = vadd.f32 -1.4531521, %v120_v44 }
  0xf8   :  { %v122_v47 = vmul.f32 %v551_v42, %v121_v45 }
  0xfa   :  { %v123_v48 = vadd.f32 1.4214138, %v122_v47 }
  0xfc   :  { %v124_v49 = vmul.f32 %v551_v42, %v123_v48 }
  0xfe   :  { %v125_v50 = vadd.f32 -0.28449672, %v124_v49 }
 0x100   :  { %v126_v51 = vmul.f32 %v551_v42, %v125_v50 }
 0x102   :  { %v127_v52 = vadd.f32 0.2548296, %v126_v51  ;;  %v371_v51 = vld [vmem:[%s784_s6] ss:$0 sm:$0xff] }
 0x104   :  { %v128_v53 = vmul.f32 %v551_v42, %v127_v52 }
 0x106   :  { %v133_v55 = vmul.f32 %v553_v54, %v128_v53 }
 0x108   :  { %v134_v56 = vsub.f32 1.0, %v133_v55 }
 0x10a   :  { %v136_v57 = vsub.f32 0.0, %v134_v56 }
 0x10c   :  { %v137_v58 = vsel %vm135_vm2, %v136_v57, %v134_v56 }
 0x10d   :  { %v138_v60 = vadd.f32 1.0, %v137_v58 }
 0x10f   :  { %v139_v61 = vmul.f32 %v138_v60, %v113_v59 }
 0x111   :  { %455 = vmatmul.mubr.f32.vlgmr.msra.gmra.mrb[0].mxu1 %v139_v61 }
 0x1e4   :  { %v229_v24 = vpop.f32.mrb[0].mxu1 }
 0x1e5   :  { %v230_v25 = vadd.f32 %v370_v23, %v229_v24  ;;  %v456_v26 = vpop.f32.mrb[1].mxu1 }
 0x1e7   :  { %v234_v27 = vmul.f32 0.70710677, %v230_v25  ;;  %v233_v48 = vmul.f32 0.5, %v230_v25 }
 0x1e9   :  { %v235_v28 = vand.u32 2147483647, %v234_v27  ;;  %vm255_vm3 = vcmp.lt.f32.partialorder %v234_v27, 0.0 }
 0x1eb   :  { %v236_v3 = vmul.f32 0.3275911, %v235_v28  ;;  %v249_v30 = vsub.f32 0.0, %v235_v28 }
 0x1ed   :  { %v237_v29 = vadd.f32 1.0, %v236_v3  ;;  %v250_v32 = vmul.f32 %v249_v30, %v235_v28 }
 0x1ef   :  { %554 = vrcp.f32 %v237_v29  ;;  %v251_v35 = vmul.f32 1.442695, %v250_v32 }
 0x1f1   :  { %556 = vpow2.f32 %v251_v35 }
 0x1f9   :  { %v555_v31 = vpop.eup %554 }
 0x1fa   :  { %v240_v33 = vmul.f32 1.0614054, %v555_v31 }
 0x1fb   :  { %v557_v43 = vpop.eup %556 }
 0x1fc   :  { %v241_v34 = vadd.f32 -1.4531521, %v240_v33 }
 0x1fe   :  { %v242_v36 = vmul.f32 %v555_v31, %v241_v34 }
 0x200   :  { %v243_v37 = vadd.f32 1.4214138, %v242_v36 }
 0x202   :  { %v244_v38 = vmul.f32 %v555_v31, %v243_v37 }
 0x204   :  { %v245_v39 = vadd.f32 -0.28449672, %v244_v38 }
 0x206   :  { %v246_v40 = vmul.f32 %v555_v31, %v245_v39 }
 0x208   :  { %v247_v41 = vadd.f32 0.2548296, %v246_v40 }
 0x20a   :  { %v248_v42 = vmul.f32 %v555_v31, %v247_v41 }
 0x20c   :  { %v253_v44 = vmul.f32 %v557_v43, %v248_v42 }
 0x20e   :  { %v254_v45 = vsub.f32 1.0, %v253_v44 }
 0x210   :  { %v256_v46 = vsub.f32 0.0, %v254_v45 }
 0x212   :  { %v257_v47 = vsel %vm255_vm3, %v256_v46, %v254_v45 }
 0x213   :  { %v258_v49 = vadd.f32 1.0, %v257_v47 }
 0x215   :  { %v259_v50 = vmul.f32 %v258_v49, %v233_v48 }
 0x217   :  { %490 = vmatmul.mubr.f32.vlgmr.msra.gmra.mrb[2].mxu0 %v259_v50 }
 0x2ea   :  { %v349_v52 = vpop.f32.mrb[2].mxu0 }
 0x2eb   :  { %v350_v53 = vadd.f32 %v371_v51, %v349_v52  ;;  %v491_v54 = vpop.f32.mrb[3].mxu0 }
 0x2ed   :  { %353 = vst.msk [vmem:[#allocation2] sm:$0xff] %vm39_vm1, %v350_v53 }
 0x2ee   :  { %569 = shalt.err (!%p566_p4)
}
 0x2ef   :  { %s570_s28 = scalar_lea.hbm %s785_s7, 128 }
 0x2f0   :  { %p571_p5 = scmp.ne.s32.totalorder %s785_s7, %s570_s28  ;;  %p574_p6 = scmp.lt.u32.totalorder %s570_s28, %s785_s7 }
 0x2f2   :  { %p576_p7 = pnand %p574_p6, %p571_p5 }
 0x2f4   :  { %579 = shalt.err (!%p576_p7)
}
 0x2f5   :  { %363 = dma.vmem_to_hbm [thread:$0]  %s361_s24, 128, %s785_s7, [#allocation3]  }
 0x2f6   :  { %580 = dma.done.wait [#allocation3], 128  }
 0x2f7   :  { %581 = vsyncadd [#allocation3], 4294967168 }
 0x2f8   :  { %367 = vsyncpa [#allocation3], 1 }

</bundles_post_ra>
